<compile_context>
chip_gen: v6e
topology: v6e:2x2x1
jax: 0.10.0
libtpu: 0.0.40
codegen_flags: <defaults>
</compile_context>

<pallas_src>
import jax
import jax.numpy as jnp
from jax import lax
from jax.experimental import pallas as pl
from jax.experimental.pallas import tpu as pltpu


# --------------------------------------------------------------------------- #
# Helpers.
# --------------------------------------------------------------------------- #
def _round_up(v, m):
    return (v + m - 1) // m * m


def _vmem_capacity_bytes():
    """Generation-aware VMEM capacity with a conservative (v7x) fallback."""
    try:
        info = pltpu.get_tpu_info()
        for name in ("vmem_capacity_bytes", "vmem_size_bytes", "vmem_bytes"):
            v = getattr(info, name, None)
            if v:
                return int(v)
    except Exception:
        pass
    return 64 << 20  # v7x per-core VMEM (smallest of v5e/v6e/v7x)


# --------------------------------------------------------------------------- #
# Operator construction (hoisted out of the per-forward path: depends only on the
# weights and sizes, so callers should build it once per weight update and reuse).
# --------------------------------------------------------------------------- #
def _dft_matrices(n, m):
    """Truncated forward / inverse real-DFT matrices (angles reduced mod N)."""
    idx_n = jnp.arange(n, dtype=jnp.int32)
    idx_m = jnp.arange(m, dtype=jnp.int32)
    prod = (idx_n[:, None] * idx_m[None, :]) % n                 # (N, M) int
    ang = (2.0 * jnp.pi / n) * prod.astype(jnp.float32)
    fr = jnp.cos(ang)                                            # (N, M)
    fi = -jnp.sin(ang)                                           # (N, M)
    # irfft with zeros above M:  y[p] = sum_m coef[m]*(Re cos - Im sin)
    coef = jnp.where((idx_m > 0) & (idx_m * 2 < n), 2.0, 1.0).astype(jnp.float32) / n
    gr = coef[:, None] * fr.T                                    # (M, N)   coef*cos
    gi = coef[:, None] * fi.T                                    # (M, N)  -coef*sin
    return fr, fi, gr, gi


def build_spectral_operator(w_real, w_imag, n, *, compute_dtype=jnp.bfloat16):
    """Returns F (N, 2M) and G (C_in*2M, C_out*N) in `compute_dtype`."""
    w_real = w_real.astype(jnp.float32)
    w_imag = w_imag.astype(jnp.float32)
    c_in, c_out, m = w_real.shape
    fr, fi, gr, gi = _dft_matrices(n, m)

    # Forward: per-channel truncated rDFT with [real | imag] mode columns.
    f_mat = jnp.concatenate([fr, fi], axis=1).astype(compute_dtype)     # (N, 2M)

    # Inverse: fold the complex spectral weights W into the inverse rDFT.
    #   real-mode rows: wr*gr + wi*gi     imag-mode rows: wr*gi - wi*gr
    g_re = (jnp.einsum('iom,mn->imon', w_real, gr)
            + jnp.einsum('iom,mn->imon', w_imag, gi))                   # (Cin, M, Cout, N)
    g_im = (jnp.einsum('iom,mn->imon', w_real, gi)
            - jnp.einsum('iom,mn->imon', w_imag, gr))
    g_mat = jnp.concatenate([g_re, g_im], axis=1).reshape(
        c_in * 2 * m, c_out * n).astype(compute_dtype)                  # (K, C_out*N)
    return f_mat, g_mat


# --------------------------------------------------------------------------- #
# Kernel.  Grid = (batch tiles, column panels of G).  Column axis is innermost.
# --------------------------------------------------------------------------- #
def _make_kernel(*, tb, c_in, two_m, w, tn, n_col, eps=1e-5):
    inv_w = 1.0 / float(w)

    def kernel(x_ref, f_ref, g_ref, gamma_ref, beta_ref, o_ref, xhat_ref, yacc_ref):
        # x_ref     : (tb, c_in, N)        input batch tile (compute dtype)
        # f_ref     : (N, 2M)              shared truncated forward rDFT
        # g_ref     : (K, tn)              column panel of folded inverse operator
        # gamma_ref : (1, W)  beta_ref : (1, W)   GroupNorm affine (per-channel, rep. N)
        # o_ref     : (tb, W)              lane-dense output block (revisited over j)
        # xhat_ref  : (tb, K)  scratch     merged-K forward-DFT coefficients
        # yacc_ref  : (n_col, tb, tn) f32  raw y panels kept for exact GroupNorm
        j = pl.program_id(1)

        # ---- Matmul 1 (once per batch tile): per-channel truncated forward rDFT
        # with the shared F.  Exact FLOPs (no kron block-diagonal waste).
        @pl.when(j == 0)
        def _():
            f = f_ref[...]
            for i in range(c_in):                               # static unroll (small)
                xh = jnp.dot(x_ref[:, i, :], f,
                             preferred_element_type=jnp.float32)      # (tb, 2M)
                xhat_ref[:, i * two_m:(i + 1) * two_m] = xh.astype(xhat_ref.dtype)

        # ---- Matmul 2: merged K = C_in*2M against the current column panel of G
        # (spectral channel mixing fused with the inverse rDFT).  f32 accumulation.
        y = jnp.dot(xhat_ref[...], g_ref[...],
                    preferred_element_type=jnp.float32)                 # (tb, tn)
        yacc_ref[j] = y

        # ---- GroupNorm(num_groups=1) finalize on the last column panel:
        # exact two-pass mean/variance over all channels*positions of each row,
        # affine folded into a single scale/shift pass.
        @pl.when(j == n_col - 1)
        def _():
            s1 = jnp.zeros((tb, 1), jnp.float32)
            for j2 in range(n_col):
                s1 = s1 + jnp.sum(yacc_ref[j2], axis=-1, keepdims=True)
            mean = s1 * inv_w
            s2 = jnp.zeros((tb, 1), jnp.float32)
            for j2 in range(n_col):
                d = yacc_ref[j2] - mean
                s2 = s2 + jnp.sum(d * d, axis=-1, keepdims=True)
            r = lax.rsqrt(s2 * inv_w + eps)
            for j2 in range(n_col):
                cols = slice(j2 * tn, (j2 + 1) * tn)
                scale = r * gamma_ref[:, cols]                           # (tb, tn)
                o_ref[:, cols] = ((yacc_ref[j2] - mean) * scale
                                  + beta_ref[:, cols]).astype(o_ref.dtype)

    return kernel


# --------------------------------------------------------------------------- #
# Tiling / VMEM budgeting.
# --------------------------------------------------------------------------- #
def _choose_tiles(batch, c_in, c_out, n, two_m, cd_bytes, out_bytes, budget):
    k = c_in * two_m
    w = c_out * n
    # Grid-invariant constants (F, gamma, beta); double-buffered by the pipeline.
    fixed = 2 * n * two_m * cd_bytes + 4 * w * 4
    # Bytes that scale with one batch row (x/out blocks double-buffered, scratches,
    # f32 finalize temporaries).
    row = (2 * c_in * n * cd_bytes          # x block
           + 2 * w * out_bytes              # output block
           + w * 4                          # yacc scratch (f32)
           + k * cd_bytes                   # xhat scratch
           + 2 * w * 4)                     # finalize temporaries (slack)
    avail = max(budget - fixed, 8 * row)

    # Batch tile: target MXU row count (256), multiple of 8, within ~half the budget,
    # padding B up instead of degenerating to tiny divisors of B.
    tb = min(256, max(8, int((avail // 2) // row) // 8 * 8), _round_up(batch, 8))
    tb = max(8, tb)
    # Keep >= 2 batch steps when possible so both v7x TensorCores get work.
    if batch > 8 and _round_up(batch, tb) <= tb:
        tb = max(8, _round_up((batch + 1) // 2, 8))

    # Column panel of G / matmul-2 output: resident if it fits, else stream
    # 128-lane-aligned panels (keeps VMEM bounded for large C_out*N, e.g. on v7x).
    g_budget = max(avail - tb * row, 2 * k * cd_bytes * 128)
    tn_cap = max(128, int(g_budget // (2 * k * cd_bytes)) // 128 * 128)
    if w <= tn_cap or w % 128 != 0:
        tn = w       # resident G (or width not 128-tileable; typical FNO N is)
    else:
        tn = 128
        d = tn_cap // 128
        while d >= 1:
            cand = 128 * d
            if w % cand == 0:
                tn = cand
                break
            d -= 1
    return tb, tn


# --------------------------------------------------------------------------- #
# Forward pass.
# --------------------------------------------------------------------------- #
def spectral_conv1d_apply(x, f_mat, g_mat, gamma, beta, *, out_dtype=jnp.float32):
    b, c_in, n = x.shape
    n_f, two_m = f_mat.shape
    k, w = g_mat.shape
    assert n_f == n and k == c_in * two_m and w % n == 0
    c_out = w // n

    cd = f_mat.dtype
    cd_bytes = jnp.dtype(cd).itemsize
    out_bytes = jnp.dtype(out_dtype).itemsize

    cap = _vmem_capacity_bytes()
    budget = min(int(cap * 0.5), 72 << 20)       # ~32 MiB on v7x, ~64 MiB on v5e/v6e
    tb, tn = _choose_tiles(b, c_in, c_out, n, two_m, cd_bytes, out_bytes, budget)
    n_col = w // tn

    b_pad = _round_up(b, tb)
    x_p = x if b_pad == b else jnp.pad(x, ((0, b_pad - b), (0, 0), (0, 0)))
    x_p = x_p.astype(cd)

    gamma_row = jnp.repeat(jnp.reshape(gamma, (c_out,)).astype(jnp.float32),
                           n).reshape(1, w)
    beta_row = jnp.repeat(jnp.reshape(beta, (c_out,)).astype(jnp.float32),
                          n).reshape(1, w)

    # VMEM estimate includes the f32 intermediates (xhat / yacc scratch, finalize
    # temporaries), per the review.
    est = (2 * n * two_m * cd_bytes + 4 * w * 4
           + 2 * tb * c_in * n * cd_bytes
           + 2 * k * tn * cd_bytes
           + 2 * tb * w * out_bytes
           + tb * k * cd_bytes + tb * w * 4
           + 2 * tb * w * 4)
    vmem_limit = max(32 << 20, int(est * 1.5))
    vmem_limit = min(vmem_limit, int(cap * 0.9))
    vmem_limit = max(vmem_limit, est + (1 << 20))

    kernel = _make_kernel(tb=tb, c_in=c_in, two_m=two_m, w=w, tn=tn, n_col=n_col)

    out = pl.pallas_call(
        kernel,
        out_shape=jax.ShapeDtypeStruct((b_pad, w), out_dtype),
        grid_spec=pltpu.PrefetchScalarGridSpec(
            num_scalar_prefetch=0,
            grid=(b_pad // tb, n_col),
            in_specs=[
                pl.BlockSpec((tb, c_in, n), lambda t, j: (t, 0, 0)),
                # NOTE: F / gamma / beta are grid-invariant (fetched once); they are
                # small, so default double-buffering is kept for portability
                # (pl.Buffered(1) would halve their footprint).
                pl.BlockSpec((n, two_m), lambda t, j: (0, 0)),
                pl.BlockSpec((k, tn), lambda t, j: (0, j)),
                pl.BlockSpec((1, w), lambda t, j: (0, 0)),
                pl.BlockSpec((1, w), lambda t, j: (0, 0)),
            ],
            out_specs=pl.BlockSpec((tb, w), lambda t, j: (t, 0)),
            scratch_shapes=[
                pltpu.VMEM((tb, k), cd),                     # merged-K xhat
                pltpu.VMEM((n_col, tb, tn), jnp.float32),    # raw y panels
            ],
        ),
        compiler_params=pltpu.CompilerParams(
            dimension_semantics=("parallel", "arbitrary"),
            vmem_limit_bytes=vmem_limit,
        ),
    )(x_p, f_mat, g_mat, gamma_row, beta_row)

    return out[:b].reshape(b, c_out, n)


def spectral_conv1d(x, w_real, w_imag, gamma, beta, modes1, *,
                    compute_dtype=jnp.bfloat16, out_dtype=jnp.float32):
    """x: (B, C_in, N).  w_real/w_imag: (C_in, C_out, modes1).  gamma/beta: (C_out,).

    compute_dtype controls the MXU operand dtype (bf16 default, f32 accumulation;
    GroupNorm math is always f32).  For repeated forwards, call
    build_spectral_operator() once per weight update and reuse it with
    spectral_conv1d_apply() -- operator construction is hoisted out of the kernel.
    """
    _, _, n = x.shape
    assert w_real.shape[-1] == modes1 and modes1 <= n // 2 + 1
    f_mat, g_mat = build_spectral_operator(w_real, w_imag, n,
                                           compute_dtype=compute_dtype)
    return spectral_conv1d_apply(x, f_mat, g_mat, gamma, beta, out_dtype=out_dtype)


# --------------------------------------------------------------------------- #
# Pure-JAX reference mirroring the PyTorch forward (uses jnp.fft).
# --------------------------------------------------------------------------- #
def reference(x, w_real, w_imag, gamma, beta, modes1):
    B, c_in, N = x.shape
    c_out = w_real.shape[1]
    x_ft = jnp.fft.rfft(x, axis=-1)
    w = w_real + 1j * w_imag
    out_ft = jnp.zeros((B, c_out, N // 2 + 1), dtype=jnp.complex64)
    out_ft = out_ft.at[:, :, :modes1].set(
        jnp.einsum('bix,iox->box', x_ft[:, :, :modes1], w))
    y = jnp.fft.irfft(out_ft, n=N, axis=-1).astype(jnp.float32)
    mean = y.mean(axis=(1, 2), keepdims=True)
    var = y.var(axis=(1, 2), keepdims=True)       # biased, matching GroupNorm
    y = (y - mean) / jnp.sqrt(var + 1e-5)
    return y * gamma[None, :, None] + beta[None, :, None]


if __name__ == "__main__":
    B, C_IN, C_OUT, N, MODES1 = 2, 4, 4, 16, 8

    key = jax.random.PRNGKey(0)
    kx, kwr, kwi = jax.random.split(key, 3)

    x = jax.random.normal(kx, (B, C_IN, N), dtype=jnp.float32)

    # weights1 = scale * rand(...) complex  -> split into real / imag parts.
    scale = 1.0 / (C_IN * C_OUT)
    w_real = scale * jax.random.uniform(kwr, (C_IN, C_OUT, MODES1), dtype=jnp.float32)
    w_imag = scale * jax.random.uniform(kwi, (C_IN, C_OUT, MODES1), dtype=jnp.float32)

    # GroupNorm affine params (default init: weight=1, bias=0).
    gamma = jnp.ones((C_OUT,), dtype=jnp.float32)
    beta = jnp.zeros((C_OUT,), dtype=jnp.float32)

    ref = jax.block_until_ready(reference(x, w_real, w_imag, gamma, beta, MODES1))

    # Exact path (f32 MXU operands) -- validates the algorithm tightly.
    out32 = jax.block_until_ready(
        spectral_conv1d(x, w_real, w_imag, gamma, beta, MODES1,
                        compute_dtype=jnp.float32))
    assert out32.shape == (B, C_OUT, N)
    assert jnp.allclose(out32, ref, atol=5e-4, rtol=1e-3), (
        f"f32 path max abs err {jnp.max(jnp.abs(out32 - ref))}")

    # Fast path (bf16 MXU operands, f32 accumulation) -- the default.
    out_bf = jax.block_until_ready(
        spectral_conv1d(x, w_real, w_imag, gamma, beta, MODES1))
    assert out_bf.shape == (B, C_OUT, N)
    assert jnp.allclose(out_bf, ref, atol=1e-1, rtol=1e-1), (
        f"bf16 path max abs err {jnp.max(jnp.abs(out_bf - ref))}")

    print("KERNEL_OK")
</pallas_src>

<mosaic_0001>
module attributes {stable_mosaic.version = 11 : i64} {
  func.func @kernel(%arg0: i32, %arg1: i32, %arg2: memref<8x4x16xf32, #tpu.memory_space<vmem>>, %arg3: memref<16x16xf32, #tpu.memory_space<vmem>>, %arg4: memref<64x64xf32, #tpu.memory_space<vmem>>, %arg5: memref<1x64xf32, #tpu.memory_space<vmem>>, %arg6: memref<1x64xf32, #tpu.memory_space<vmem>>, %arg7: memref<8x64xf32, #tpu.memory_space<vmem>>, %arg8: memref<8x64xf32, #tpu.memory_space<vmem>>, %arg9: memref<1x8x64xf32, #tpu.memory_space<vmem>>) attributes {dimension_semantics = [#tpu.dimension_semantics<parallel>, #tpu.dimension_semantics<arbitrary>], iteration_bounds = array<i64: 1, 1>, scalar_prefetch = 0 : i64, scratch_operands = 2 : i64, tpu.core_type = #tpu.core_type<tc>, window_params = [{transform_indices = @transform_0, window_bounds = array<i64: 8, 4, 16>}, {pipeline_mode = #tpu.pipeline_mode<synchronous>, transform_indices = @transform_1, window_bounds = array<i64: 16, 16>}, {transform_indices = @transform_2, window_bounds = array<i64: 64, 64>}, {pipeline_mode = #tpu.pipeline_mode<synchronous>, transform_indices = @transform_3, window_bounds = array<i64: 1, 64>}, {pipeline_mode = #tpu.pipeline_mode<synchronous>, transform_indices = @transform_4, window_bounds = array<i64: 1, 64>}, {transform_indices = @transform_5, window_bounds = array<i64: 8, 64>}]} {
    %c0_i32 = arith.constant 0 : i32
    %0 = arith.cmpi eq, %arg1, %c0_i32 : i32
    %1 = arith.extui %0 : i1 to i32
    %c0_i32_0 = arith.constant 0 : i32
    %2 = arith.cmpi ne, %1, %c0_i32_0 : i32
    scf.if %2 {
      %c0_8 = arith.constant 0 : index
      %c0_9 = arith.constant 0 : index
      %13 = vector.load %arg3[%c0_8, %c0_9] : memref<16x16xf32, #tpu.memory_space<vmem>>, vector<16x16xf32>
      %c0_10 = arith.constant 0 : index
      %c0_11 = arith.constant 0 : index
      %c0_12 = arith.constant 0 : index
      %14 = vector.load %arg2[%c0_10, %c0_11, %c0_12] : memref<8x4x16xf32, #tpu.memory_space<vmem>>, vector<8x1x16xf32>
      %15 = vector.shape_cast %14 : vector<8x1x16xf32> to vector<8x16xf32>
      %cst_13 = arith.constant dense<0.000000e+00> : vector<8x16xf32>
      %16 = tpu.matmul %15, %13, %cst_13 {dimension_numbers = #tpu.dot_dimension_numbers<[1], [0], [0], [1], [0, 0, 1, 1], [], []>} : vector<8x16xf32>, vector<16x16xf32>, vector<8x16xf32> -> vector<8x16xf32>
      %c0_14 = arith.constant 0 : index
      %c0_15 = arith.constant 0 : index
      %17 = vector.load %arg8[%c0_14, %c0_15] : memref<8x64xf32, #tpu.memory_space<vmem>>, vector<8x16xf32>
      tpu.vector_store %arg8[%c0_14, %c0_15], %16 {strides = array<i32>} : memref<8x64xf32, #tpu.memory_space<vmem>>, vector<8x16xf32>,
      %c0_16 = arith.constant 0 : index
      %c1 = arith.constant 1 : index
      %c0_17 = arith.constant 0 : index
      %18 = vector.load %arg2[%c0_16, %c1, %c0_17] : memref<8x4x16xf32, #tpu.memory_space<vmem>>, vector<8x1x16xf32>
      %19 = vector.shape_cast %18 : vector<8x1x16xf32> to vector<8x16xf32>
      %cst_18 = arith.constant dense<0.000000e+00> : vector<8x16xf32>
      %20 = tpu.matmul %19, %13, %cst_18 {dimension_numbers = #tpu.dot_dimension_numbers<[1], [0], [0], [1], [0, 0, 1, 1], [], []>} : vector<8x16xf32>, vector<16x16xf32>, vector<8x16xf32> -> vector<8x16xf32>
      %c0_19 = arith.constant 0 : index
      %c16 = arith.constant 16 : index
      %21 = vector.load %arg8[%c0_19, %c16] : memref<8x64xf32, #tpu.memory_space<vmem>>, vector<8x16xf32>
      tpu.vector_store %arg8[%c0_19, %c16], %20 {strides = array<i32>} : memref<8x64xf32, #tpu.memory_space<vmem>>, vector<8x16xf32>,
      %c0_20 = arith.constant 0 : index
      %c2 = arith.constant 2 : index
      %c0_21 = arith.constant 0 : index
      %22 = vector.load %arg2[%c0_20, %c2, %c0_21] : memref<8x4x16xf32, #tpu.memory_space<vmem>>, vector<8x1x16xf32>
      %23 = vector.shape_cast %22 : vector<8x1x16xf32> to vector<8x16xf32>
      %cst_22 = arith.constant dense<0.000000e+00> : vector<8x16xf32>
      %24 = tpu.matmul %23, %13, %cst_22 {dimension_numbers = #tpu.dot_dimension_numbers<[1], [0], [0], [1], [0, 0, 1, 1], [], []>} : vector<8x16xf32>, vector<16x16xf32>, vector<8x16xf32> -> vector<8x16xf32>
      %c0_23 = arith.constant 0 : index
      %c32 = arith.constant 32 : index
      %25 = vector.load %arg8[%c0_23, %c32] : memref<8x64xf32, #tpu.memory_space<vmem>>, vector<8x16xf32>
      tpu.vector_store %arg8[%c0_23, %c32], %24 {strides = array<i32>} : memref<8x64xf32, #tpu.memory_space<vmem>>, vector<8x16xf32>,
      %c0_24 = arith.constant 0 : index
      %c3 = arith.constant 3 : index
      %c0_25 = arith.constant 0 : index
      %26 = vector.load %arg2[%c0_24, %c3, %c0_25] : memref<8x4x16xf32, #tpu.memory_space<vmem>>, vector<8x1x16xf32>
      %27 = vector.shape_cast %26 : vector<8x1x16xf32> to vector<8x16xf32>
      %cst_26 = arith.constant dense<0.000000e+00> : vector<8x16xf32>
      %28 = tpu.matmul %27, %13, %cst_26 {dimension_numbers = #tpu.dot_dimension_numbers<[1], [0], [0], [1], [0, 0, 1, 1], [], []>} : vector<8x16xf32>, vector<16x16xf32>, vector<8x16xf32> -> vector<8x16xf32>
      %c0_27 = arith.constant 0 : index
      %c48 = arith.constant 48 : index
      %29 = vector.load %arg8[%c0_27, %c48] : memref<8x64xf32, #tpu.memory_space<vmem>>, vector<8x16xf32>
      tpu.vector_store %arg8[%c0_27, %c48], %28 {strides = array<i32>} : memref<8x64xf32, #tpu.memory_space<vmem>>, vector<8x16xf32>,
    } else {
    }
    %c0 = arith.constant 0 : index
    %c0_1 = arith.constant 0 : index
    %3 = vector.load %arg8[%c0, %c0_1] : memref<8x64xf32, #tpu.memory_space<vmem>>, vector<8x64xf32>
    %c0_2 = arith.constant 0 : index
    %c0_3 = arith.constant 0 : index
    %4 = vector.load %arg4[%c0_2, %c0_3] : memref<64x64xf32, #tpu.memory_space<vmem>>, vector<64x64xf32>
    %cst = arith.constant dense<0.000000e+00> : vector<8x64xf32>
    %5 = tpu.matmul %3, %4, %cst {dimension_numbers = #tpu.dot_dimension_numbers<[1], [0], [0], [1], [0, 0, 1, 1], [], []>} : vector<8x64xf32>, vector<64x64xf32>, vector<8x64xf32> -> vector<8x64xf32>
    %6 = arith.index_cast %arg1 : i32 to index
    %c0_4 = arith.constant 0 : index
    %c0_5 = arith.constant 0 : index
    %7 = vector.load %arg9[%6, %c0_4, %c0_5] : memref<1x8x64xf32, #tpu.memory_space<vmem>>, vector<1x8x64xf32>
    %8 = vector.shape_cast %7 : vector<1x8x64xf32> to vector<8x64xf32>
    %9 = vector.shape_cast %5 : vector<8x64xf32> to vector<1x8x64xf32>
    tpu.vector_store %arg9[%6, %c0_4, %c0_5], %9 {strides = array<i32>} : memref<1x8x64xf32, #tpu.memory_space<vmem>>, vector<1x8x64xf32>,
    %c0_i32_6 = arith.constant 0 : i32
    %10 = arith.cmpi eq, %arg1, %c0_i32_6 : i32
    %11 = arith.extui %10 : i1 to i32
    %c0_i32_7 = arith.constant 0 : i32
    %12 = arith.cmpi ne, %11, %c0_i32_7 : i32
    scf.if %12 {
      %cst_8 = arith.constant 0.000000e+00 : f32
      %13 = vector.broadcast %cst_8 : f32 to vector<8x1xf32>
      %c0_9 = arith.constant 0 : index
      %c0_10 = arith.constant 0 : index
      %c0_11 = arith.constant 0 : index
      %14 = vector.load %arg9[%c0_9, %c0_10, %c0_11] : memref<1x8x64xf32, #tpu.memory_space<vmem>>, vector<1x8x64xf32>
      %15 = vector.shape_cast %14 : vector<1x8x64xf32> to vector<8x64xf32>
      %cst_12 = arith.constant dense<0.000000e+00> : vector<8xf32>
      %16 = vector.multi_reduction <add>, %15, %cst_12 [1] : vector<8x64xf32> to vector<8xf32>
      %17 = vector.shape_cast %16 : vector<8xf32> to vector<8x1xf32>
      %18 = arith.addf %13, %17 : vector<8x1xf32>
      %cst_13 = arith.constant 1.562500e-02 : f32
      %19 = vector.broadcast %cst_13 : f32 to vector<8x1xf32>
      %20 = arith.mulf %18, %19 : vector<8x1xf32>
      %cst_14 = arith.constant 0.000000e+00 : f32
      %21 = vector.broadcast %cst_14 : f32 to vector<8x1xf32>
      %c0_15 = arith.constant 0 : index
      %c0_16 = arith.constant 0 : index
      %c0_17 = arith.constant 0 : index
      %22 = vector.load %arg9[%c0_15, %c0_16, %c0_17] : memref<1x8x64xf32, #tpu.memory_space<vmem>>, vector<1x8x64xf32>
      %23 = vector.shape_cast %22 : vector<1x8x64xf32> to vector<8x64xf32>
      %24 = vector.broadcast %20 : vector<8x1xf32> to vector<8x64xf32>
      %25 = arith.subf %23, %24 : vector<8x64xf32>
      %26 = arith.mulf %25, %25 : vector<8x64xf32>
      %cst_18 = arith.constant dense<0.000000e+00> : vector<8xf32>
      %27 = vector.multi_reduction <add>, %26, %cst_18 [1] : vector<8x64xf32> to vector<8xf32>
      %28 = vector.shape_cast %27 : vector<8xf32> to vector<8x1xf32>
      %29 = arith.addf %21, %28 : vector<8x1xf32>
      %cst_19 = arith.constant 1.562500e-02 : f32
      %30 = vector.broadcast %cst_19 : f32 to vector<8x1xf32>
      %31 = arith.mulf %29, %30 : vector<8x1xf32>
      %cst_20 = arith.constant 9.99999974E-6 : f32
      %32 = vector.broadcast %cst_20 : f32 to vector<8x1xf32>
      %33 = arith.addf %31, %32 : vector<8x1xf32>
      %34 = math.rsqrt %33 : vector<8x1xf32>
      %c0_21 = arith.constant 0 : index
      %c0_22 = arith.constant 0 : index
      %35 = vector.load %arg5[%c0_21, %c0_22] : memref<1x64xf32, #tpu.memory_space<vmem>>, vector<1x64xf32>
      %36 = vector.broadcast %34 : vector<8x1xf32> to vector<8x64xf32>
      %37 = vector.broadcast %35 : vector<1x64xf32> to vector<8x64xf32>
      %38 = arith.mulf %36, %37 : vector<8x64xf32>
      %c0_23 = arith.constant 0 : index
      %c0_24 = arith.constant 0 : index
      %c0_25 = arith.constant 0 : index
      %39 = vector.load %arg9[%c0_23, %c0_24, %c0_25] : memref<1x8x64xf32, #tpu.memory_space<vmem>>, vector<1x8x64xf32>
      %40 = vector.shape_cast %39 : vector<1x8x64xf32> to vector<8x64xf32>
      %41 = vector.broadcast %20 : vector<8x1xf32> to vector<8x64xf32>
      %42 = arith.subf %40, %41 : vector<8x64xf32>
      %43 = arith.mulf %42, %38 : vector<8x64xf32>
      %c0_26 = arith.constant 0 : index
      %c0_27 = arith.constant 0 : index
      %44 = vector.load %arg6[%c0_26, %c0_27] : memref<1x64xf32, #tpu.memory_space<vmem>>, vector<1x64xf32>
      %45 = vector.broadcast %44 : vector<1x64xf32> to vector<8x64xf32>
      %46 = arith.addf %43, %45 : vector<8x64xf32>
      %c0_28 = arith.constant 0 : index
      %c0_29 = arith.constant 0 : index
      %47 = vector.load %arg7[%c0_28, %c0_29] : memref<8x64xf32, #tpu.memory_space<vmem>>, vector<8x64xf32>
      tpu.vector_store %arg7[%c0_28, %c0_29], %46 {strides = array<i32>} : memref<8x64xf32, #tpu.memory_space<vmem>>, vector<8x64xf32>,
    } else {
    }
    return
  }
  func.func @transform_0(%arg0: i32, %arg1: i32) -> (i32, i32, i32) {
    %c0_i32 = arith.constant 0 : i32
    %c0_i32_0 = arith.constant 0 : i32
    %c0_i32_1 = arith.constant 0 : i32
    return %arg0, %c0_i32, %c0_i32_0 : i32, i32, i32
  }
  func.func @transform_1(%arg0: i32, %arg1: i32) -> (i32, i32) {
    %c0_i32 = arith.constant 0 : i32
    %c0_i32_0 = arith.constant 0 : i32
    %c0_i32_1 = arith.constant 0 : i32
    return %c0_i32, %c0_i32_0 : i32, i32
  }
  func.func @transform_2(%arg0: i32, %arg1: i32) -> (i32, i32) {
    %c0_i32 = arith.constant 0 : i32
    %c0_i32_0 = arith.constant 0 : i32
    return %c0_i32, %arg1 : i32, i32
  }
  func.func @transform_3(%arg0: i32, %arg1: i32) -> (i32, i32) {
    %c0_i32 = arith.constant 0 : i32
    %c0_i32_0 = arith.constant 0 : i32
    %c0_i32_1 = arith.constant 0 : i32
    return %c0_i32, %c0_i32_0 : i32, i32
  }
  func.func @transform_4(%arg0: i32, %arg1: i32) -> (i32, i32) {
    %c0_i32 = arith.constant 0 : i32
    %c0_i32_0 = arith.constant 0 : i32
    %c0_i32_1 = arith.constant 0 : i32
    return %c0_i32, %c0_i32_0 : i32, i32
  }
  func.func @transform_5(%arg0: i32, %arg1: i32) -> (i32, i32) {
    %c0_i32 = arith.constant 0 : i32
    %c0_i32_0 = arith.constant 0 : i32
    return %arg0, %c0_i32 : i32, i32
  }
}

</mosaic_0001>

<bundles_post_ra>
// kernel: tpu_custom_call.1
= control target key start
LH: loop header
LB: loop body
LE: loop exit
PB: predicated region body
PF: predicated region fallthrough
CT: control target
= control target key end

     0   :  { %10 = vsyncpa [#allocation5], 0  ;;  %s954_s0 = inlined_call_operand.hbm [shape: f32[8,4,16], index: 0, kind: input, shape index: {}]   ;;  %s955_s1 = inlined_call_operand.hbm [shape: f32[16,16], index: 1, kind: input, shape index: {}]   ;;  %s956_s2 = inlined_call_operand.hbm [shape: f32[64,64], index: 2, kind: input, shape index: {}]   ;;  %s957_s3 = inlined_call_operand.vmem [shape: f32[1,64], index: 3, kind: input, shape index: {}]   ;;  %s958_s4 = inlined_call_operand.vmem [shape: f32[1,64], index: 4, kind: input, shape index: {}]   ;;  %s959_s5 = inlined_call_operand.hbm [shape: f32[8,64], index: 5, kind: output, shape index: {}]  }
   0x1   :  { %11 = vsyncpa [#allocation8], 0 }
   0x2   :  { %12 = vsyncpa [#allocation6], 0  ;;  %s817_s18 = smov [#allocation7]  }
   0x3   :  { %s30_s19 = sshll.u32 %s817_s18, 4  ;;  %s31_s19 = int_to_ptr.vmem [resolvable:$true] %s30_s19 }
   0x4   :  { %s739_s20 = scalar_lea.vmem %s31_s19, 256  ;;  %p744_p1 = scmp.lt.s32.totalorder %s31_s19, %s31_s19 }
   0x5   :  { %p740_p0 = scmp.ne.s32.totalorder %s31_s19, %s739_s20  ;;  %p745_p2 = scmp.lt.s32.totalorder %s739_s20, %s739_s20 }
   0x7   :  { %p746_p3 = por %p745_p2, %p744_p1 }
   0x9   :  { %p747_p4 = pnand %p746_p3, %p740_p0 }
   0xb   :  { %750 = shalt.err (!%p747_p4)
}
   0xc   :  { %s818_s21 = smov 128   ;;  %s819_s22 = smov 8  }
   0xd   :  { %36 = dma.hbm_to_vmem [thread:$0]  %s955_s1, 256, %s31_s19, [#allocation8], %s818_s21, %s818_s21, %s819_s22  }
   0xe   :  { %s820_s25 = smov [#allocation4]  }
   0xf   :  { %s18_s26 = sshll.u32 %s820_s25, 4  ;;  %s19_s26 = int_to_ptr.vmem [resolvable:$true] %s18_s26 }
  0x10   :  { %s759_s27 = scalar_lea.vmem %s19_s26, 512  ;;  %p764_p6 = scmp.lt.s32.totalorder %s19_s26, %s19_s26 }
  0x11   :  { %p760_p5 = scmp.ne.s32.totalorder %s19_s26, %s759_s27  ;;  %p765_p7 = scmp.lt.s32.totalorder %s759_s27, %s759_s27 }
  0x13   :  { %p766_p8 = por %p765_p7, %p764_p6 }
  0x15   :  { %p767_p9 = pnand %p766_p8, %p760_p5 }
  0x17   :  { %770 = shalt.err (!%p767_p9)
}
  0x18   :  { %s821_s28 = smov 64   ;;  %s822_s29 = smov 4  }
  0x19   :  { %24 = dma.hbm_to_vmem [thread:$0]  %s954_s0, 512, %s19_s26, [#allocation5], %s821_s28, %s821_s28, %s822_s29  }
  0x1a   :  { %s823_s7 = smov [#allocation9]  }
  0x1b   :  { %s42_s8 = sshll.u32 %s823_s7, 4  ;;  %s43_s8 = int_to_ptr.vmem [resolvable:$true] %s42_s8 }
  0x1c   :  { %s779_s1 = scalar_lea.vmem %s43_s8, 1024  ;;  %p784_p11 = scmp.lt.s32.totalorder %s43_s8, %s43_s8 }
  0x1d   :  { %p780_p10 = scmp.ne.s32.totalorder %s43_s8, %s779_s1  ;;  %p785_p12 = scmp.lt.s32.totalorder %s779_s1, %s779_s1 }
  0x1f   :  { %p786_p13 = por %p785_p12, %p784_p11 }
  0x21   :  { %p787_p0 = pnand %p786_p13, %p780_p10 }
  0x23   :  { %790 = shalt.err (!%p787_p0)
}
  0x24   :  { %48 = dma.hbm_to_vmem [thread:$0]  %s956_s2, 1024, %s43_s8, [#allocation8], %s818_s21, %s818_s21, %s819_s22  }
  0x25   :  { %811 = dma.done.wait [#allocation5], 512  }
  0x26   :  { %812 = vsyncadd [#allocation5], 4294966784 }
  0x27   :  { %813 = dma.done.wait [#allocation8], 1280  }
  0x28   :  { %814 = vsyncadd [#allocation8], 4294966016  ;;  %v824_v0 = vmov 0.0   ;;  %vm825_vm0 = vmmov 0   ;;  %vm85_vm1 = vcmask 1041409   ;;  %vm88_vm2 = vcmask 1042434  }
  0x29   :  { %669 = vmatprep.subr.mxu1 %v824_v0  ;;  %673 = vmatprep.mubr.msk.f32.mxu1 %vm825_vm0, %v824_v0  ;;  %vm91_vm3 = vcmask 1043459   ;;  %vm94_vm4 = vcmask 1044484   ;;  %v875_v1 = vld [vmem:[#allocation7 + $0x8] sm:$0xff]  ;;  %v877_v2 = vld [vmem:[#allocation7] sm:$0xff]  ;;  %vm97_vm5 = vcmask 1045509   ;;  %vm100_vm6 = vcmask 1046534  }
  0x2a   :  { %697 = vmatprep.subr.mxu0 %v824_v0  ;;  %713 = vmatprep.mubr.msk.f32.mxu0 %vm825_vm0, %v824_v0  ;;  %v68_v3 = vld [vmem:[#allocation4] sm:$0x1]  ;;  %v69_v4 = vld [vmem:[#allocation4 + $0x4] sm:$0x1]  ;;  %v70_v5 = vld [vmem:[#allocation4 + $0x8] sm:$0x1] }
  0x2b   :  { %670 = vmatpush3.msra.mxu1 %v875_v1  ;;  %v71_v6 = vld [vmem:[#allocation4 + $0xc] sm:$0x1]  ;;  %v72_v7 = vld [vmem:[#allocation4 + $0x10] sm:$0x1]  ;;  %v73_v8 = vld [vmem:[#allocation4 + $0x14] sm:$0x1] }
  0x2c   :  { %671 = vmatprep.subr.mxu1 %v824_v0  ;;  %v74_v9 = vld [vmem:[#allocation4 + $0x18] sm:$0x1]  ;;  %v75_v10 = vld [vmem:[#allocation4 + $0x1c] sm:$0x1]  ;;  %v84_v11 = vrot.slane %v69_v4, 7  ;;  %v87_v12 = vrot.slane %v70_v5, 6 }
  0x2d   :  { %672 = vmatpush3.msra.mxu1 %v877_v2  ;;  %v90_v13 = vrot.slane %v71_v6, 5  ;;  %vm103_vm7 = vcmask 1047559   ;;  %v93_v14 = vrot.slane %v72_v7, 4  ;;  %v96_v15 = vrot.slane %v73_v8, 3  ;;  %v179_v18 = vld [vmem:[#allocation4 + $0x1] sm:$0x1] }
  0x2e   :  { %676 = vmatprep.subr.mxu1 %v824_v0  ;;  %v99_v16 = vrot.slane %v74_v9, 2  ;;  %v102_v17 = vrot.slane %v75_v10, 1  ;;  %v86_v19 = vsel %vm85_vm1, %v84_v11, %v68_v3  ;;  %v180_v20 = vld [vmem:[#allocation4 + $0x5] sm:$0x1]  ;;  %v181_v21 = vld [vmem:[#allocation4 + $0x9] sm:$0x1] }
  0x2f   :  { %v182_v22 = vld [vmem:[#allocation4 + $0xd] sm:$0x1]  ;;  %v89_v23 = vsel %vm88_vm2, %v87_v12, %v86_v19  ;;  %v183_v24 = vld [vmem:[#allocation4 + $0x11] sm:$0x1]  ;;  %v184_v25 = vld [vmem:[#allocation4 + $0x15] sm:$0x1] }
  0x30   :  { %v185_v26 = vld [vmem:[#allocation4 + $0x19] sm:$0x1]  ;;  %v92_v27 = vsel %vm91_vm3, %v90_v13, %v89_v23  ;;  %v186_v28 = vld [vmem:[#allocation4 + $0x1d] sm:$0x1]  ;;  %v195_v29 = vrot.slane %v180_v20, 7  ;;  %v197_v30 = vrot.slane %v181_v21, 6 }
  0x31   :  { %v199_v31 = vrot.slane %v182_v22, 5  ;;  %v95_v32 = vsel %vm94_vm4, %v93_v14, %v92_v27  ;;  %vm105_vm8 = vcmask 130048   ;;  %v201_v33 = vrot.slane %v183_v24, 4  ;;  %v287_v35 = vld [vmem:[#allocation4 + $0x2] sm:$0x1]  ;;  %s826_s0 = smov 16  }
  0x32   :  { %v203_v34 = vrot.slane %v184_v25, 3  ;;  %v98_v36 = vsel %vm97_vm5, %v96_v15, %v95_v32  ;;  %v196_v37 = vsel %vm85_vm1, %v195_v29, %v179_v18  ;;  %v205_v38 = vrot.slane %v185_v26, 2  ;;  %v288_v40 = vld [vmem:[#allocation4 + $0x6] sm:$0x1]  ;;  %v289_v41 = vld [vmem:[#allocation4 + $0xa] sm:$0x1] }
  0x33   :  { %v207_v39 = vrot.slane %v186_v28, 1  ;;  %v101_v42 = vsel %vm100_vm6, %v99_v16, %v98_v36  ;;  %v198_v43 = vsel %vm88_vm2, %v197_v30, %v196_v37  ;;  %v290_v44 = vld [vmem:[#allocation4 + $0xe] sm:$0x1]  ;;  %v291_v45 = vld [vmem:[#allocation4 + $0x12] sm:$0x1]  ;;  %v303_v51 = vrot.slane %v288_v40, 7 }
  0x34   :  { %v292_v46 = vld [vmem:[#allocation4 + $0x16] sm:$0x1]  ;;  %v104_v47 = vsel %vm103_vm7, %v102_v17, %v101_v42  ;;  %v200_v48 = vsel %vm91_vm3, %v199_v31, %v198_v43  ;;  %v293_v49 = vld [vmem:[#allocation4 + $0x1a] sm:$0x1]  ;;  %v294_v50 = vld [vmem:[#allocation4 + $0x1e] sm:$0x1] }
  0x35   :  { %v305_v52 = vrot.slane %v289_v41, 6  ;;  %674 = vmatmul.mubr.msk.f32.vlgmr.msra.gmra.mxu1 %vm105_vm8, %v104_v47  ;;  %v202_v53 = vsel %vm94_vm4, %v201_v33, %v200_v48  ;;  %v307_v54 = vrot.slane %v290_v44, 5  ;;  %v309_v55 = vrot.slane %v291_v45, 4  ;;  %v395_v57 = vld [vmem:[#allocation4 + $0x3] sm:$0x1]  ;;  %v511_v30 = vld [vmem:[#allocation9 + $0x38] sm:$0xff] }
  0x36   :  { %v311_v56 = vrot.slane %v292_v46, 3  ;;  %677 = vmatpush3.msra.mxu1 %v875_v1  ;;  %680 = vmatprep.mubr.msk.f32.mxu1 %vm825_vm0, %v824_v0  ;;  %v204_v58 = vsel %vm97_vm5, %v203_v34, %v202_v53  ;;  %v304_v59 = vsel %vm85_vm1, %v303_v51, %v287_v35  ;;  %v313_v60 = vrot.slane %v293_v49, 2  ;;  %v396_v62 = vld [vmem:[#allocation4 + $0x7] sm:$0x1]  ;;  %v397_v63 = vld [vmem:[#allocation4 + $0xb] sm:$0x1] }
  0x37   :  { %v315_v61 = vrot.slane %v294_v50, 1  ;;  %678 = vmatprep.subr.mxu1 %v824_v0  ;;  %v206_v3 = vsel %vm100_vm6, %v205_v38, %v204_v58  ;;  %v306_v4 = vsel %vm88_vm2, %v305_v52, %v304_v59  ;;  %v398_v5 = vld [vmem:[#allocation4 + $0xf] sm:$0x1]  ;;  %v399_v6 = vld [vmem:[#allocation4 + $0x13] sm:$0x1]  ;;  %v411_v11 = vrot.slane %v396_v62, 7  ;;  %698 = vmatpush3.msra.mxu0 %v511_v30 }
  0x38   :  { %v400_v7 = vld [vmem:[#allocation4 + $0x17] sm:$0x1]  ;;  %679 = vmatpush3.msra.mxu1 %v877_v2  ;;  %v208_v8 = vsel %vm103_vm7, %v207_v39, %v206_v3  ;;  %v308_v9 = vsel %vm91_vm3, %v307_v54, %v306_v4  ;;  %v401_v10 = vld [vmem:[#allocation4 + $0x1b] sm:$0x1]  ;;  %v413_v12 = vrot.slane %v397_v63, 6  ;;  %v415_v15 = vrot.slane %v398_v5, 5  ;;  %699 = vmatprep.subr.mxu0 %v824_v0 }
  0x39   :  { %683 = vmatprep.subr.mxu1 %v824_v0  ;;  %681 = vmatmul.mubr.msk.f32.vlgmr.msra.gmra.mxu1 %vm105_vm8, %v208_v8  ;;  %v310_v13 = vsel %vm94_vm4, %v309_v55, %v308_v9  ;;  %v402_v14 = vld [vmem:[#allocation4 + $0x1f] sm:$0x1]  ;;  %v417_v16 = vrot.slane %v399_v6, 4  ;;  %v412_v18 = vsel %vm85_vm1, %v411_v11, %v395_v57  ;;  %v419_v19 = vrot.slane %v400_v7, 3  ;;  %v510_v31 = vld [vmem:[#allocation9 + $0x30] sm:$0xff]  ;;  %v508_v32 = vld [vmem:[#allocation9 + $0x20] sm:$0xff] }
  0x3a   :  { %684 = vmatpush3.msra.mxu1 %v875_v1  ;;  %687 = vmatprep.mubr.msk.f32.mxu1 %vm825_vm0, %v824_v0  ;;  %v312_v17 = vsel %vm97_vm5, %v311_v56, %v310_v13  ;;  %v414_v21 = vsel %vm88_vm2, %v413_v12, %v412_v18  ;;  %v421_v22 = vrot.slane %v401_v10, 2  ;;  %v423_v25 = vrot.slane %v402_v14, 1  ;;  %v506_v34 = vld [vmem:[#allocation9 + $0x10] sm:$0xff]  ;;  %v505_v36 = vld [vmem:[#allocation9 + $0x8] sm:$0xff]  ;;  %v504_v38 = vld [vmem:[#allocation9] sm:$0xff]  ;;  %s827_s2 = smov 32  }
  0x3b   :  { %685 = vmatprep.subr.mxu1 %v824_v0  ;;  %v314_v20 = vsel %vm100_vm6, %v313_v60, %v312_v17  ;;  %v416_v24 = vsel %vm91_vm3, %v415_v15, %v414_v21  ;;  %700 = vmatpush3.msra.mxu0 %v510_v31  ;;  %s828_s11 = smov 48   ;;  %vm285_vm9 = vcmask 261248   ;;  %vm393_vm10 = vcmask 392448   ;;  %v646_v59 = vld [vmem:[%s957_s3] ss:$0 sm:$0xff]  ;;  %s829_s16 = smov [#allocation10]  }
  0x3c   :  { %686 = vmatpush3.msra.mxu1 %v877_v2  ;;  %v316_v23 = vsel %vm103_vm7, %v315_v61, %v314_v20  ;;  %v418_v26 = vsel %vm94_vm4, %v417_v16, %v416_v24  ;;  %701 = vmatprep.subr.mxu0 %v824_v0  ;;  %vm501_vm11 = vcmask 523648   ;;  %vm512_vm12 = vcmask 523264   ;;  %v647_v62 = vld [vmem:[%s958_s4] ss:$0 sm:$0xff]  ;;  %s631_s17 = sshll.u32 %s829_s16, 4  ;;  %s632_s17 = int_to_ptr.vmem [resolvable:$true] %s631_s17 }
  0x3d   :  { %690 = vmatprep.subr.mxu1 %v824_v0  ;;  %688 = vmatmul.mubr.msk.f32.vlgmr.msra.gmra.mxu1 %vm105_vm8, %v316_v23  ;;  %v420_v27 = vsel %vm97_vm5, %v419_v19, %v418_v26  ;;  %s791_s18 = scalar_lea.vmem %s632_s17, 128  ;;  %p796_p2 = scmp.lt.s32.totalorder %s632_s17, %s632_s17 }
  0x3e   :  { %691 = vmatpush3.msra.mxu1 %v875_v1  ;;  %694 = vmatprep.mubr.msk.f32.mxu1 %vm825_vm0, %v824_v0  ;;  %v422_v28 = vsel %vm100_vm6, %v421_v22, %v420_v27  ;;  %v509_v1 = vld [vmem:[#allocation9 + $0x28] sm:$0xff]  ;;  %p792_p1 = scmp.ne.s32.totalorder %s632_s17, %s791_s18  ;;  %p797_p3 = scmp.lt.s32.totalorder %s791_s18, %s791_s18 }
  0x3f   :  { %692 = vmatprep.subr.mxu1 %v824_v0  ;;  %v424_v29 = vsel %vm103_vm7, %v423_v25, %v422_v28  ;;  %702 = vmatpush3.msra.mxu0 %v509_v1 }
  0x40   :  { %693 = vmatpush3.msra.mxu1 %v877_v2  ;;  %703 = vmatprep.subr.mxu0 %v824_v0  ;;  %v507_v2 = vld [vmem:[#allocation9 + $0x18] sm:$0xff]  ;;  %p798_p4 = por %p797_p3, %p796_p2 }
  0x41   :  { %695 = vmatmul.mubr.msk.f32.vlgmr.msra.gmra.mxu1 %vm105_vm8, %v424_v29  ;;  %704 = vmatpush3.msra.mxu0 %v508_v32 }
  0x42   :  { %705 = vmatprep.subr.mxu0 %v824_v0  ;;  %p799_p5 = pnand %p798_p4, %p792_p1 }
  0x43   :  { %706 = vmatpush3.msra.mxu0 %v507_v2 }
  0x44   :  { %707 = vmatprep.subr.mxu0 %v824_v0 }
  0x45   :  { %708 = vmatpush3.msra.mxu0 %v506_v34 }
  0x46   :  { %709 = vmatprep.subr.mxu0 %v824_v0 }
  0x47   :  { %710 = vmatpush3.msra.mxu0 %v505_v36 }
  0x48   :  { %711 = vmatprep.subr.mxu0 %v824_v0 }
  0x49   :  { %712 = vmatpush3.msra.mxu0 %v504_v38 }
  0xf5   :  { %v174_v33 = vpop.f32.mrf.mxu1 }
  0xf6   :  { %178 = vst.msk [vmem:[#allocation2] sm:$0xff] %vm105_vm8, %v174_v33 }
  0xf7   :  { %v675_v35 = vpop.f32.mrf.mxu1 }
  0xf9   :  { %v277_v37 = vpop.f32.mrf.mxu1 }
  0xfa   :  { %282 = vrot.lane.b32.xlu0 %v277_v37, %s826_s0 }
  0xfb   :  { %v682_v39 = vpop.f32.mrf.mxu1 }
  0xfd   :  { %v385_v40 = vpop.f32.mrf.mxu1 }
  0xfe   :  { %390 = vrot.lane.b32.xlu0 %v385_v40, %s827_s2 }
  0xff   :  { %v689_v41 = vpop.f32.mrf.mxu1 }
 0x101   :  { %v493_v42 = vpop.f32.mrf.mxu1 }
 0x102   :  { %498 = vrot.lane.b32.xlu1 %v493_v42, %s828_s11 }
 0x103   :  { %v696_v43 = vpop.f32.mrf.mxu1 }
 0x16c   :  { %v283_v44 = vpop.permute.xlu0 %282 }
 0x16d   :  { %286 = vst.msk [vmem:[#allocation2] sm:$0xff] %vm285_vm9, %v283_v44 }
 0x170   :  { %v391_v45 = vpop.permute.xlu0 %390 }
 0x171   :  { %394 = vst.msk [vmem:[#allocation2] sm:$0xff] %vm393_vm10, %v391_v45 }
 0x174   :  { %v499_v46 = vpop.permute.xlu1 %498 }
 0x175   :  { %502 = vst.msk [vmem:[#allocation2] sm:$0xff] %vm501_vm11, %v499_v46 }
 0x17c   :  { %v503_v0 = vld [vmem:[#allocation2] sm:$0xff] }
 0x17d   :  { %714 = vmatmul.mubr.msk.f32.vlgmr.msra.gmra.mxu0 %vm512_vm12, %v503_v0 }
 0x23d   :  { %v582_v47 = vpop.f32.mrf.mxu0 }
 0x23e   :  { %588 = vst.msk [vmem:[#allocation3] sm:$0xff] %vm512_vm12, %v582_v47 }
 0x23f   :  { %v715_v48 = vpop.f32.mrf.mxu0 }
 0x245   :  { %v592_v49 = vld [vmem:[#allocation3] sm:$0xff] }
 0x246   :  { %v593_v50 = vsel %vm512_vm12, %v592_v49, 0.0 }
 0x247   :  { %594 = vadd.xlane.f32.xlu1 %v593_v50 }
 0x2d0   :  { %v595_v51 = vpop.xlane.xlu1 %594 }
 0x2d1   :  { %v597_v52 = vmul.f32 0.015625, %v595_v51 }
 0x2d3   :  { %v598_v53 = vsub.f32 %v592_v49, %v597_v52 }
 0x2d5   :  { %v599_v54 = vmul.f32 %v598_v53, %v598_v53 }
 0x2d7   :  { %v600_v55 = vsel %vm512_vm12, %v599_v54, 0.0 }
 0x2d8   :  { %601 = vadd.xlane.f32.xlu0 %v600_v55 }
 0x361   :  { %v602_v56 = vpop.xlane.xlu0 %601 }
 0x362   :  { %v604_v57 = vmul.f32 0.015625, %v602_v56 }
 0x364   :  { %v605_v58 = vadd.f32 1e-05, %v604_v57 }
 0x366   :  { %729 = vrsqrt.f32 %v605_v58 }
 0x373   :  { %v730_v60 = vpop.eup %729 }
 0x374   :  { %v614_v61 = vmul.f32 %v730_v60, %v646_v59 }
 0x376   :  { %v615_v63 = vmul.f32 %v614_v61, %v598_v53 }
 0x378   :  { %v623_v3 = vadd.f32 %v647_v62, %v615_v63 }
 0x37a   :  { %624 = vst.msk [vmem:[#allocation10] sm:$0xff] %vm512_vm12, %v623_v3 }
 0x37b   :  { %802 = shalt.err (!%p799_p5)
}
 0x37c   :  { %634 = dma.vmem_to_hbm [thread:$0]  %s632_s17, 128, %s959_s5, [#allocation6]  }
 0x37d   :  { %815 = dma.done.wait [#allocation6], 128  }
 0x37e   :  { %816 = vsyncadd [#allocation6], 4294967168 }
 0x37f   :  { %638 = vsyncpa [#allocation5], 1 }
 0x380   :  { %639 = vsyncpa [#allocation8], 1 }
 0x381   :  { %640 = vsyncpa [#allocation6], 1 }

</bundles_post_ra>
